<compile_context>
chip_gen: v7x
topology: tpu7x:2x2x1
jax: 0.10.0
libtpu: 0.0.40
codegen_flags: <defaults>
</compile_context>

<pallas_src>
import jax
import jax.numpy as jnp
from jax.experimental import pallas as pl
from jax.experimental.pallas import tpu as pltpu


_FEATURES = (
    ("gender_emb", "gender", 2),
    ("college_emb", "college", 7),
    ("school_emb", "school", 8),
    ("mbti_emb", "mbti", 17),
)
_OFFSETS = (0, 2, 9, 17)              # row/col offset of each block in the big table
_N_TOTAL = 2 + 7 + 8 + 17             # 34
_N_PAD = ((_N_TOTAL + 7) // 8) * 8    # 40 (sublane-aligned)


def matching_kernel(idxa_ref, idxb_ref, tbl_ref, out_ref):
    """Per grid step: factored bilinear table lookup + sigmoid.

    idxa_ref : (4, TB) int32 -- userA index per feature, offset into [0, 34)
    idxb_ref : (4, TB) int32 -- userB index per feature, offset into [0, 34)
    tbl_ref  : (40, 40) f32  -- block-diag pre-scaled cos-sim table (+bias in
                                the gender block), zero padded
    out_ref  : (1, TB) f32   -- sigmoid scores, batch on the lane axis
    """
    tb = out_ref.shape[1]
    n = tbl_ref.shape[0]
    # Single hoisted iota shared by both one-hot constructions.
    j = jax.lax.broadcasted_iota(jnp.int32, (n, tb), 0)

    def hits(idx_ref):
        h = j == idx_ref[0:1, :]
        for f in range(1, 4):          # feature index ranges are disjoint -> OR
            h = h | (j == idx_ref[f:f + 1, :])
        return h                       # (n, tb) bool, 4 ones per column

    hit_a = hits(idxa_ref)
    hit_b = hits(idxb_ref)

    onehot_b = hit_b.astype(jnp.float32)                      # (n, tb) f32
    # MXU: picks column iB of every table block for every lane.
    p = jnp.dot(tbl_ref[...], onehot_b,
                preferred_element_type=jnp.float32)           # (n, tb)
    # Mask with the A-side one-hot, then ONE cross-sublane reduction.
    contrib = jnp.where(hit_a, p, 0.0)                        # (n, tb)
    score = jnp.sum(contrib, axis=0, keepdims=True)           # (1, tb)
    out_ref[...] = jax.nn.sigmoid(score)


def _pairwise_cos(emb, eps=1e-8):
    e = emb.astype(jnp.float32)
    dots = e @ e.T                                            # (n, n)
    norms = jnp.sqrt(jnp.sum(e * e, axis=-1))                 # (n,)
    return dots / jnp.maximum(norms[:, None] * norms[None, :], eps)


def _build_table(params):
    """Block-diagonal (40, 40) table: cos_f * weight[f] * final_fc_w[f], bias folded."""
    w_eff = (params["weight"].astype(jnp.float32) *
             params["final_fc_w"].reshape(4).astype(jnp.float32))
    bias = params["final_fc_b"].astype(jnp.float32).reshape(())
    tbl = jnp.zeros((_N_PAD, _N_PAD), jnp.float32)
    for f, (emb_name, _key, n) in enumerate(_FEATURES):
        block = _pairwise_cos(params[emb_name]) * w_eff[f]
        if f == 0:
            # Exactly one (row, col) of the gender block is selected per pair,
            # so folding the bias here adds it exactly once.
            block = block + bias
        off = _OFFSETS[f]
        tbl = tbl.at[off:off + n, off:off + n].set(block)
    return tbl


def _choose_tb(batch, cap=2048):
    """Adaptive lane tile: >=2 blocks when possible (v7x megacore), capped."""
    per_core = (batch + 1) // 2
    tb = ((per_core + 127) // 128) * 128
    return max(128, min(cap, tb))


def matching_forward(params, userA, userB, *, tb=None):
    """Forward pass of MatchingModel (interest=None path) via a Pallas kernel."""
    idx_a = jnp.stack(
        [userA[key].astype(jnp.int32) + off
         for (_e, key, _n), off in zip(_FEATURES, _OFFSETS)], axis=0)   # (4, B)
    idx_b = jnp.stack(
        [userB[key].astype(jnp.int32) + off
         for (_e, key, _n), off in zip(_FEATURES, _OFFSETS)], axis=0)   # (4, B)
    B = idx_a.shape[1]

    if tb is None:
        tb = _choose_tb(B)
    assert tb % 128 == 0, "tb must be a multiple of 128 (lane-dense blocks)"

    num_blocks = pl.cdiv(B, tb)
    b_pad = num_blocks * tb
    idx_a = jnp.pad(idx_a, ((0, 0), (0, b_pad - B)))   # padded lanes -> index 0 (valid)
    idx_b = jnp.pad(idx_b, ((0, 0), (0, b_pad - B)))

    tbl = _build_table(params)                         # (40, 40) f32, resident

    out = pl.pallas_call(
        matching_kernel,
        out_shape=jax.ShapeDtypeStruct((1, b_pad), jnp.float32),
        grid=(num_blocks,),
        in_specs=[
            pl.BlockSpec((4, tb), lambda i: (0, i)),             # userA indices
            pl.BlockSpec((4, tb), lambda i: (0, i)),             # userB indices
            pl.BlockSpec((_N_PAD, _N_PAD), lambda i: (0, 0)),    # table, resident
        ],
        out_specs=pl.BlockSpec((1, tb), lambda i: (0, i)),
        compiler_params=pltpu.CompilerParams(
            dimension_semantics=("parallel",),                   # megacore on v7x
            vmem_limit_bytes=32 << 20,                           # ample headroom
        ),
    )(idx_a, idx_b, tbl)

    return out[0, :B].reshape(B, 1)


def init_params(key):
    ks = jax.random.split(key, 6)
    params = {
        "gender_emb":  jax.random.normal(ks[0], (2, 4),    jnp.float32),
        "college_emb": jax.random.normal(ks[1], (7, 64),   jnp.float32),
        "school_emb":  jax.random.normal(ks[2], (8, 64),   jnp.float32),
        "mbti_emb":    jax.random.normal(ks[3], (17, 512), jnp.float32),
        # final_fc: nn.Linear(4, 1) -> weight (1, 4), bias (1,)
        "final_fc_w":  jax.random.uniform(ks[4], (1, 4), jnp.float32, -0.5, 0.5),
        "final_fc_b":  jax.random.uniform(ks[5], (1,),   jnp.float32, -0.5, 0.5),
        # self.weight = [1, 1, 1, 1]
        "weight":      jnp.ones((4,), jnp.float32),
    }
    return params


def matching_reference(params, userA, userB):
    """Pure-JAX reference mirroring the PyTorch forward (interest=None path)."""
    def cos(a, b, eps=1e-8):
        num = jnp.sum(a * b, axis=-1)
        na = jnp.sqrt(jnp.sum(a * a, axis=-1))
        nb = jnp.sqrt(jnp.sum(b * b, axis=-1))
        return num / jnp.maximum(na * nb, eps)

    sims = jnp.stack([
        cos(params["gender_emb"][userA["gender"]],   params["gender_emb"][userB["gender"]]),
        cos(params["college_emb"][userA["college"]], params["college_emb"][userB["college"]]),
        cos(params["school_emb"][userA["school"]],   params["school_emb"][userB["school"]]),
        cos(params["mbti_emb"][userA["mbti"]],       params["mbti_emb"][userB["mbti"]]),
    ], axis=1)                                                  # (B, 4)
    weighted = sims * params["weight"]
    score = (jnp.sum(weighted * params["final_fc_w"].reshape(4), axis=-1, keepdims=True)
             + params["final_fc_b"])
    return jax.nn.sigmoid(score)


def _make_users(key, B):
    ks = jax.random.split(key, 8)
    userA = {
        "gender":  jax.random.randint(ks[0], (B,), 0, 2),
        "school":  jax.random.randint(ks[1], (B,), 0, 8),
        "college": jax.random.randint(ks[2], (B,), 0, 7),
        "mbti":    jax.random.randint(ks[3], (B,), 0, 17),
    }
    userB = {
        "gender":  jax.random.randint(ks[4], (B,), 0, 2),
        "school":  jax.random.randint(ks[5], (B,), 0, 8),
        "college": jax.random.randint(ks[6], (B,), 0, 7),
        "mbti":    jax.random.randint(ks[7], (B,), 0, 17),
    }
    return userA, userB


if __name__ == "__main__":
    key = jax.random.PRNGKey(0)
    pkey, ikey1, ikey2 = jax.random.split(key, 3)
    params = init_params(pkey)

    # Small batch: single block (tb=128).
    B1 = 8
    userA, userB = _make_users(ikey1, B1)
    out = jax.block_until_ready(matching_forward(params, userA, userB))
    ref = matching_reference(params, userA, userB)
    assert out.shape == (B1, 1)
    assert jnp.allclose(out, ref, atol=1e-5, rtol=1e-5), (out, ref)

    # Larger batch: exercises padding + a 2-block parallel grid (megacore path).
    B2 = 384
    userA2, userB2 = _make_users(ikey2, B2)
    out2 = jax.block_until_ready(matching_forward(params, userA2, userB2))
    ref2 = matching_reference(params, userA2, userB2)
    assert out2.shape == (B2, 1)
    assert jnp.allclose(out2, ref2, atol=1e-5, rtol=1e-5), (out2, ref2)

    print("KERNEL_OK")
</pallas_src>

<mosaic_0001>
module attributes {stable_mosaic.version = 11 : i64} {
  func.func @matching_kernel(%arg0: i32, %arg1: memref<4x128xi32, #tpu.memory_space<vmem>>, %arg2: memref<4x128xi32, #tpu.memory_space<vmem>>, %arg3: memref<40x40xf32, #tpu.memory_space<vmem>>, %arg4: memref<1x128xf32, #tpu.memory_space<vmem>>) attributes {dimension_semantics = [#tpu.dimension_semantics<parallel>], iteration_bounds = array<i64: 1>, scalar_prefetch = 0 : i64, scratch_operands = 0 : i64, tpu.core_type = #tpu.core_type<tc>, window_params = [{transform_indices = @transform_0, window_bounds = array<i64: 4, 128>}, {transform_indices = @transform_1, window_bounds = array<i64: 4, 128>}, {pipeline_mode = #tpu.pipeline_mode<synchronous>, transform_indices = @transform_2, window_bounds = array<i64: 40, 40>}, {transform_indices = @transform_3, window_bounds = array<i64: 1, 128>}]} {
    %0 = tpu.iota {dimensions = array<i32: 0>} : vector<40x128xi32>
    %c0 = arith.constant 0 : index
    %c0_0 = arith.constant 0 : index
    %1 = vector.load %arg1[%c0, %c0_0] : memref<4x128xi32, #tpu.memory_space<vmem>>, vector<1x128xi32>
    %2 = vector.broadcast %1 : vector<1x128xi32> to vector<40x128xi32>
    %3 = arith.cmpi eq, %0, %2 : vector<40x128xi32>
    %c1 = arith.constant 1 : index
    %c0_1 = arith.constant 0 : index
    %4 = vector.load %arg1[%c1, %c0_1] : memref<4x128xi32, #tpu.memory_space<vmem>>, vector<1x128xi32>
    %5 = vector.broadcast %4 : vector<1x128xi32> to vector<40x128xi32>
    %6 = arith.cmpi eq, %0, %5 : vector<40x128xi32>
    %7 = arith.ori %3, %6 : vector<40x128xi1>
    %c2 = arith.constant 2 : index
    %c0_2 = arith.constant 0 : index
    %8 = vector.load %arg1[%c2, %c0_2] : memref<4x128xi32, #tpu.memory_space<vmem>>, vector<1x128xi32>
    %9 = vector.broadcast %8 : vector<1x128xi32> to vector<40x128xi32>
    %10 = arith.cmpi eq, %0, %9 : vector<40x128xi32>
    %11 = arith.ori %7, %10 : vector<40x128xi1>
    %c3 = arith.constant 3 : index
    %c0_3 = arith.constant 0 : index
    %12 = vector.load %arg1[%c3, %c0_3] : memref<4x128xi32, #tpu.memory_space<vmem>>, vector<1x128xi32>
    %13 = vector.broadcast %12 : vector<1x128xi32> to vector<40x128xi32>
    %14 = arith.cmpi eq, %0, %13 : vector<40x128xi32>
    %15 = arith.ori %11, %14 : vector<40x128xi1>
    %c0_4 = arith.constant 0 : index
    %c0_5 = arith.constant 0 : index
    %16 = vector.load %arg2[%c0_4, %c0_5] : memref<4x128xi32, #tpu.memory_space<vmem>>, vector<1x128xi32>
    %17 = vector.broadcast %16 : vector<1x128xi32> to vector<40x128xi32>
    %18 = arith.cmpi eq, %0, %17 : vector<40x128xi32>
    %c1_6 = arith.constant 1 : index
    %c0_7 = arith.constant 0 : index
    %19 = vector.load %arg2[%c1_6, %c0_7] : memref<4x128xi32, #tpu.memory_space<vmem>>, vector<1x128xi32>
    %20 = vector.broadcast %19 : vector<1x128xi32> to vector<40x128xi32>
    %21 = arith.cmpi eq, %0, %20 : vector<40x128xi32>
    %22 = arith.ori %18, %21 : vector<40x128xi1>
    %c2_8 = arith.constant 2 : index
    %c0_9 = arith.constant 0 : index
    %23 = vector.load %arg2[%c2_8, %c0_9] : memref<4x128xi32, #tpu.memory_space<vmem>>, vector<1x128xi32>
    %24 = vector.broadcast %23 : vector<1x128xi32> to vector<40x128xi32>
    %25 = arith.cmpi eq, %0, %24 : vector<40x128xi32>
    %26 = arith.ori %22, %25 : vector<40x128xi1>
    %c3_10 = arith.constant 3 : index
    %c0_11 = arith.constant 0 : index
    %27 = vector.load %arg2[%c3_10, %c0_11] : memref<4x128xi32, #tpu.memory_space<vmem>>, vector<1x128xi32>
    %28 = vector.broadcast %27 : vector<1x128xi32> to vector<40x128xi32>
    %29 = arith.cmpi eq, %0, %28 : vector<40x128xi32>
    %30 = arith.ori %26, %29 : vector<40x128xi1>
    %31 = arith.extui %30 : vector<40x128xi1> to vector<40x128xi32>
    %32 = arith.sitofp %31 : vector<40x128xi32> to vector<40x128xf32>
    %c0_12 = arith.constant 0 : index
    %c0_13 = arith.constant 0 : index
    %33 = vector.load %arg3[%c0_12, %c0_13] : memref<40x40xf32, #tpu.memory_space<vmem>>, vector<40x40xf32>
    %cst = arith.constant dense<0.000000e+00> : vector<40x128xf32>
    %34 = tpu.matmul %33, %32, %cst {dimension_numbers = #tpu.dot_dimension_numbers<[1], [0], [0], [1], [0, 0, 1, 1], [], []>} : vector<40x40xf32>, vector<40x128xf32>, vector<40x128xf32> -> vector<40x128xf32>
    %cst_14 = arith.constant 0.000000e+00 : f32
    %35 = vector.broadcast %cst_14 : f32 to vector<40x128xf32>
    %36 = arith.select %15, %34, %35 : vector<40x128xi1>, vector<40x128xf32>
    %cst_15 = arith.constant dense<0.000000e+00> : vector<128xf32>
    %37 = vector.multi_reduction <add>, %36, %cst_15 [0] : vector<40x128xf32> to vector<128xf32>
    %38 = vector.shape_cast %37 : vector<128xf32> to vector<1x128xf32>
    %39 = arith.negf %38 : vector<1x128xf32>
    %40 = math.exp %39 : vector<1x128xf32>
    %cst_16 = arith.constant 1.000000e+00 : f32
    %41 = vector.broadcast %cst_16 : f32 to vector<1x128xf32>
    %42 = arith.addf %41, %40 : vector<1x128xf32>
    %43 = arith.divf %41, %42 : vector<1x128xf32>
    %c0_17 = arith.constant 0 : index
    %c0_18 = arith.constant 0 : index
    %44 = vector.load %arg4[%c0_17, %c0_18] : memref<1x128xf32, #tpu.memory_space<vmem>>, vector<1x128xf32>
    tpu.vector_store %arg4[%c0_17, %c0_18], %43 {strides = array<i32>} : memref<1x128xf32, #tpu.memory_space<vmem>>, vector<1x128xf32>,
    return
  }
  func.func @transform_0(%arg0: i32) -> (i32, i32) {
    %c0_i32 = arith.constant 0 : i32
    %c0_i32_0 = arith.constant 0 : i32
    return %c0_i32, %arg0 : i32, i32
  }
  func.func @transform_1(%arg0: i32) -> (i32, i32) {
    %c0_i32 = arith.constant 0 : i32
    %c0_i32_0 = arith.constant 0 : i32
    return %c0_i32, %arg0 : i32, i32
  }
  func.func @transform_2(%arg0: i32) -> (i32, i32) {
    %c0_i32 = arith.constant 0 : i32
    %c0_i32_0 = arith.constant 0 : i32
    %c0_i32_1 = arith.constant 0 : i32
    return %c0_i32, %c0_i32_0 : i32, i32
  }
  func.func @transform_3(%arg0: i32) -> (i32, i32) {
    %c0_i32 = arith.constant 0 : i32
    %c0_i32_0 = arith.constant 0 : i32
    return %c0_i32, %arg0 : i32, i32
  }
}

</mosaic_0001>

<bundles_post_ra>
// kernel: tpu_custom_call.1
= control target key start
LH: loop header
LB: loop body
LE: loop exit
PB: predicated region body
PF: predicated region fallthrough
CT: control target
= control target key end

     0   :  { %8 = vsyncpa [#allocation3], 0  ;;  %s664_s0 = inlined_call_operand.hbm [shape: s32[4,128], index: 0, kind: input, shape index: {}]   ;;  %s665_s1 = inlined_call_operand.hbm [shape: s32[4,128], index: 1, kind: input, shape index: {}]   ;;  %s666_s2 = inlined_call_operand.hbm [shape: f32[40,40], index: 2, kind: input, shape index: {}]   ;;  %s667_s3 = inlined_call_operand.hbm [shape: f32[1,128], index: 3, kind: output, shape index: {}]  }
   0x1   :  { %9 = vsyncpa [#allocation6], 0 }
   0x2   :  { %10 = vsyncpa [#allocation4], 0  ;;  %s507_s12 = smov [#allocation5]   ;;  %s508_s14 = smov [#allocation2]  }
   0x3   :  { %s27_s13 = sshll.u32 %s507_s12, 4  ;;  %s17_s15 = sshll.u32 %s508_s14, 4  ;;  %s28_s13 = int_to_ptr.vmem [resolvable:$true] %s27_s13  ;;  %s18_s15 = int_to_ptr.vmem [resolvable:$true] %s17_s15 }
   0x4   :  { %s413_s18 = scalar_lea.hbm %s665_s1, 64 }
   0x5   :  { %p414_p0 = scmp.ne.s32.totalorder %s665_s1, %s413_s18  ;;  %p417_p1 = scmp.lt.u32.totalorder %s413_s18, %s665_s1 }
   0x7   :  { %p419_p2 = pnand %p417_p1, %p414_p0 }
   0x9   :  { %422 = shalt.err (!%p419_p2)
}
   0xa   :  { %s423_s23 = scalar_lea.vmem %s28_s13, 64  ;;  %p428_p4 = scmp.lt.s32.totalorder %s28_s13, %s28_s13 }
   0xb   :  { %p424_p3 = scmp.ne.s32.totalorder %s28_s13, %s423_s23  ;;  %p429_p5 = scmp.lt.s32.totalorder %s423_s23, %s423_s23 }
   0xd   :  { %p430_p6 = por %p429_p5, %p428_p4 }
   0xf   :  { %p431_p7 = pnand %p430_p6, %p424_p3 }
  0x11   :  { %434 = shalt.err (!%p431_p7)
}
  0x12   :  { %30 = dma.hbm_to_vmem [thread:$0]  %s665_s1, 64, %s28_s13, [#allocation6]  }
  0x13   :  { %s435_s28 = scalar_lea.hbm %s664_s0, 64 }
  0x14   :  { %p436_p8 = scmp.ne.s32.totalorder %s664_s0, %s435_s28  ;;  %p439_p9 = scmp.lt.u32.totalorder %s435_s28, %s664_s0 }
  0x16   :  { %p441_p10 = pnand %p439_p9, %p436_p8 }
  0x18   :  { %444 = shalt.err (!%p441_p10)
}
  0x19   :  { %s445_s6 = scalar_lea.vmem %s18_s15, 64  ;;  %p450_p12 = scmp.lt.s32.totalorder %s18_s15, %s18_s15 }
  0x1a   :  { %p446_p11 = scmp.ne.s32.totalorder %s18_s15, %s445_s6  ;;  %p451_p13 = scmp.lt.s32.totalorder %s445_s6, %s445_s6 }
  0x1c   :  { %p452_p0 = por %p451_p13, %p450_p12 }
  0x1e   :  { %p453_p1 = pnand %p452_p0, %p446_p11 }
  0x20   :  { %456 = shalt.err (!%p453_p1)
}
  0x21   :  { %20 = dma.hbm_to_vmem [thread:$0]  %s664_s0, 64, %s18_s15, [#allocation3]  }
  0x22   :  { %s509_s8 = smov [#allocation7]   ;;  %s457_s12 = scalar_lea.hbm %s666_s2, 640 }
  0x23   :  { %s36_s9 = sshll.u32 %s509_s8, 4  ;;  %p458_p2 = scmp.ne.s32.totalorder %s666_s2, %s457_s12  ;;  %s37_s9 = int_to_ptr.vmem [resolvable:$true] %s36_s9 }
  0x24   :  { %p461_p3 = scmp.lt.u32.totalorder %s457_s12, %s666_s2 }
  0x26   :  { %p463_p4 = pnand %p461_p3, %p458_p2 }
  0x28   :  { %466 = shalt.err (!%p463_p4)
}
  0x29   :  { %s467_s18 = scalar_lea.vmem %s37_s9, 640  ;;  %p472_p6 = scmp.lt.s32.totalorder %s37_s9, %s37_s9 }
  0x2a   :  { %p468_p5 = scmp.ne.s32.totalorder %s37_s9, %s467_s18  ;;  %p473_p7 = scmp.lt.s32.totalorder %s467_s18, %s467_s18 }
  0x2c   :  { %p474_p8 = por %p473_p7, %p472_p6 }
  0x2e   :  { %p475_p9 = pnand %p474_p8, %p468_p5 }
  0x30   :  { %478 = shalt.err (!%p475_p9)
}
  0x31   :  { %s510_s0 = smov 128   ;;  %s511_s15 = smov 8  }
  0x32   :  { %42 = dma.hbm_to_vmem [thread:$0]  %s666_s2, 640, %s37_s9, [#allocation6], %s510_s0, %s510_s0, %s511_s15  }
  0x33   :  { %501 = dma.done.wait [#allocation3], 64  }
  0x34   :  { %502 = vsyncadd [#allocation3], 4294967232 }
  0x35   :  { %503 = dma.done.wait [#allocation6], 704  }
  0x36   :  { %504 = vsyncadd [#allocation6], 4294966592  ;;  %v52_v0 = vlaneseq  ;;  %v512_v1 = vmov 0.0|0.0   ;;  %vm668_vm0 = vmmov 0   ;;  %v514_v3 = vmov 0.0   ;;  %v178_v13 = vld [vmem:[#allocation7] sm:$0xff] }
  0x37   :  { %386 = vmatprep.subr.bf16.mxu0 %v512_v1  ;;  %392 = vmatprep.subr.bf16.mxu1 %v512_v1  ;;  %v331_v5 = vld [vmem:[#allocation5] ss:$0 sm:$0xff]  ;;  %v332_v6 = vld [vmem:[#allocation5 + $0x1] ss:$0 sm:$0xff]  ;;  %v333_v7 = vld [vmem:[#allocation5 + $0x2] ss:$0 sm:$0xff] }
  0x38   :  { %v574_v2 = vshrl.u32 %v52_v0, 7  ;;  %371 = vmatprep.mubr.msk.f32.mxu0 %vm668_vm0, %v514_v3  ;;  %380 = vmatprep.mubr.msk.f32.mxu1 %vm668_vm0, %v514_v3  ;;  %v334_v8 = vld [vmem:[#allocation5 + $0x3] ss:$0 sm:$0xff]  ;;  %v515_v11 = vmov 1.0|1.0   ;;  %v516_v15 = vmov 1.0  }
  0x39   :  { %v181_v14 = vld [vmem:[#allocation7 + $0x18] sm:$0xff]  ;;  %v179_v16 = vld [vmem:[#allocation7 + $0x8] sm:$0xff]  ;;  %v182_v17 = vld [vmem:[#allocation7 + $0x20] sm:$0xff]  ;;  %v673_v24 = vmov 0  ;;  %s517_s2 = smov [#allocation8]  }
  0x3a   :  { %v581_v4 = vadd.s32 8, %v574_v2  ;;  %vm118_vm1 = vcmp.eq.s32.totalorder %v574_v2, %v331_v5  ;;  %vm128_vm3 = vcmp.eq.s32.totalorder %v574_v2, %v332_v6  ;;  %vm143_vm6 = vcmp.eq.s32.totalorder %v574_v2, %v333_v7  ;;  %v180_v18 = vld [vmem:[#allocation7 + $0x10] sm:$0xff]  ;;  %v327_v19 = vld [vmem:[#allocation2] ss:$0 sm:$0xff]  ;;  %v328_v20 = vld [vmem:[#allocation2 + $0x1] ss:$0 sm:$0xff] }
  0x3b   :  { %vm133_vm5 = vmor %vm118_vm1, %vm128_vm3  ;;  %v590_v9 = vadd.s32 16, %v574_v2  ;;  %vm158_vm9 = vcmp.eq.s32.totalorder %v574_v2, %v334_v8  ;;  %v594_v10 = vadd.s32 24, %v574_v2  ;;  %v604_v12 = vadd.s32 32, %v574_v2  ;;  %v329_v21 = vld [vmem:[#allocation2 + $0x2] ss:$0 sm:$0xff]  ;;  %s317_s21 = sshll.u32 %s517_s2, 4  ;;  %s318_s21 = int_to_ptr.vmem [resolvable:$true] %s317_s21 }
  0x3c   :  { %vm119_vm2 = vcmp.eq.s32.totalorder %v581_v4, %v331_v5  ;;  %vm129_vm4 = vcmp.eq.s32.totalorder %v581_v4, %v332_v6  ;;  %vm144_vm7 = vcmp.eq.s32.totalorder %v581_v4, %v333_v7  ;;  %vm148_vm10 = vmor %vm133_vm5, %vm143_vm6  ;;  %vm159_vm11 = vcmp.eq.s32.totalorder %v581_v4, %v334_v8  ;;  %v330_v22 = vld [vmem:[#allocation2 + $0x3] ss:$0 sm:$0xff]  ;;  %s479_s22 = scalar_lea.vmem %s318_s21, 16  ;;  %s483_s23 = scalar_lea.vmem %s318_s21, 32 }
  0x3d   :  { %vm134_vm8 = vmor %vm119_vm2, %vm129_vm4  ;;  %vm120_vm14 = vcmp.eq.s32.totalorder %v590_v9, %v331_v5  ;;  %vm130_vm15 = vcmp.eq.s32.totalorder %v590_v9, %v332_v6  ;;  %vm121_vm3 = vcmp.eq.s32.totalorder %v594_v10, %v331_v5  ;;  %vm131_vm0 = vcmp.eq.s32.totalorder %v594_v10, %v332_v6  ;;  %p480_p10 = scmp.ne.s32.totalorder %s318_s21, %s479_s22  ;;  %p484_p11 = scmp.lt.s32.totalorder %s318_s21, %s318_s21 }
  0x3e   :  { %vm149_vm12 = vmor %vm134_vm8, %vm144_vm7  ;;  %vm145_vm4 = vcmp.eq.s32.totalorder %v590_v9, %v333_v7  ;;  %vm146_vm6 = vcmp.eq.s32.totalorder %v594_v10, %v333_v7  ;;  %vm160_vm8 = vcmp.eq.s32.totalorder %v590_v9, %v334_v8  ;;  %p485_p12 = scmp.lt.s32.totalorder %s483_s23, %s479_s22 }
  0x3f   :  { %vm163_vm13 = vmor %vm148_vm10, %vm158_vm9  ;;  %vm161_vm10 = vcmp.eq.s32.totalorder %v594_v10, %v334_v8 }
  0x40   :  { %vm164_vm1 = vmor %vm149_vm12, %vm159_vm11  ;;  %p486_p13 = por %p485_p12, %p484_p11 }
  0x41   :  { %vm387_vm2 = vmpackc.low %vm164_vm1, %vm163_vm13  ;;  %vm122_vm13 = vcmp.eq.s32.totalorder %v604_v12, %v331_v5  ;;  %vm147_vm1 = vcmp.eq.s32.totalorder %v604_v12, %v333_v7 }
  0x42   :  { %388 = vmatpush3.bf16.msk.msra.mxu0 %vm387_vm2, %v515_v11  ;;  %vm135_vm5 = vmor %vm120_vm14, %vm130_vm15  ;;  %395 = vmatpush3.bf16.msk.msra.mxu1 %vm387_vm2, %v515_v11  ;;  %vm132_vm14 = vcmp.eq.s32.totalorder %v604_v12, %v332_v6  ;;  %p487_p0 = pnand %p486_p13, %p480_p10 }
  0x43   :  { %389 = vmatprep.subr.bf16.mxu0 %v512_v1  ;;  %vm136_vm7 = vmor %vm121_vm3, %vm131_vm0  ;;  %393 = vmatprep.subr.bf16.mxu1 %v512_v1  ;;  %vm162_vm0 = vcmp.eq.s32.totalorder %v604_v12, %v334_v8 }
  0x44   :  { %vm150_vm9 = vmor %vm135_vm5, %vm145_vm4 }
  0x45   :  { %vm151_vm11 = vmor %vm136_vm7, %vm146_vm6  ;;  %vm183_vm6 = vcmask 326656   ;;  %vm670_vm7 = vmmov 0  }
  0x46   :  { %vm165_vm12 = vmor %vm150_vm9, %vm160_vm8  ;;  %vm63_vm8 = vcmp.eq.s32.totalorder %v574_v2, %v327_v19  ;;  %vm73_vm9 = vcmp.eq.s32.totalorder %v574_v2, %v328_v20 }
  0x47   :  { %vm166_vm15 = vmor %vm151_vm11, %vm161_vm10  ;;  %vm64_vm10 = vcmp.eq.s32.totalorder %v581_v4, %v327_v19  ;;  %vm74_vm11 = vcmp.eq.s32.totalorder %v581_v4, %v328_v20 }
  0x48   :  { %vm390_vm2 = vmpackc.low %vm166_vm15, %vm165_vm12  ;;  %vm89_vm15 = vcmp.eq.s32.totalorder %v581_v4, %v329_v21 }
  0x49   :  { %391 = vmatpush3.bf16.msk.msra.mxu0 %vm390_vm2, %v515_v11  ;;  %vm137_vm3 = vmor %vm122_vm13, %vm132_vm14  ;;  %396 = vmatpush3.bf16.msk.msra.mxu1 %vm390_vm2, %v515_v11  ;;  %vm88_vm13 = vcmp.eq.s32.totalorder %v574_v2, %v329_v21  ;;  %vm103_vm2 = vcmp.eq.s32.totalorder %v574_v2, %v330_v22 }
  0x4a   :  { %369 = vmatprep.subr.mxu0 %v514_v3  ;;  %vm152_vm4 = vmor %vm137_vm3, %vm147_vm1  ;;  %394 = vmatprep.subr.mxu1 %v514_v3  ;;  %vm104_vm3 = vcmp.eq.s32.totalorder %v581_v4, %v330_v22 }
  0x4b   :  { %vm167_vm5 = vmor %vm152_vm4, %vm162_vm0  ;;  %vm65_vm4 = vcmp.eq.s32.totalorder %v590_v9, %v327_v19 }
  0x4c   :  { %vm78_vm12 = vmor %vm63_vm8, %vm73_vm9  ;;  %vm76_vm8 = vcmp.eq.s32.totalorder %v594_v10, %v328_v20 }
  0x4d   :  { %370 = vmatpush3.msk.msra.mxu0 %vm167_vm5, %v516_v15  ;;  %397 = vmatpush3.msk.msra.mxu1 %vm167_vm5, %v516_v15  ;;  %vm79_vm14 = vmor %vm64_vm10, %vm74_vm11  ;;  %vm75_vm5 = vcmp.eq.s32.totalorder %v590_v9, %v328_v20  ;;  %vm67_vm10 = vcmp.eq.s32.totalorder %v604_v12, %v327_v19  ;;  %vm77_vm11 = vcmp.eq.s32.totalorder %v604_v12, %v328_v20 }
  0x4e   :  { %372 = vmatmul.mubr.msk.f32.vlgmr.msra.gmra.mrb[0].mxu0 %vm183_vm6, %v178_v13  ;;  %381 = vmatmul.mubr.msk.f32.vlgmr.msra.gmra.mrb[0].mxu1 %vm183_vm6, %v181_v14  ;;  %vm93_vm1 = vmor %vm78_vm12, %vm88_vm13  ;;  %vm90_vm13 = vcmp.eq.s32.totalorder %v590_v9, %v329_v21 }
  0x4f   :  { %374 = vmatprep.mubr.msk.f32.mxu0 %vm670_vm7, %v514_v3  ;;  %383 = vmatprep.mubr.msk.f32.mxu1 %vm670_vm7, %v514_v3  ;;  %vm94_vm0 = vmor %vm79_vm14, %vm89_vm15  ;;  %vm91_vm15 = vcmp.eq.s32.totalorder %v594_v10, %v329_v21 }
  0x50   :  { %vm636_vm9 = vmor %vm94_vm0, %vm104_vm3  ;;  %vm105_vm3 = vcmp.eq.s32.totalorder %v590_v9, %v330_v22 }
  0x51   :  { %v674_v24 = vsel %vm636_vm9, 4294967295, %v673_v24  ;;  %vm80_vm12 = vmor %vm65_vm4, %vm75_vm5  ;;  %vm106_vm4 = vcmp.eq.s32.totalorder %v594_v10, %v330_v22 }
  0x52   :  { %375 = vmatmul.mubr.msk.f32.gmra.mrb[2].mxu0 %vm183_vm6, %v179_v16  ;;  %384 = vmatmul.mubr.msk.f32.gmra.mrb[2].mxu1 %vm183_vm6, %v182_v17  ;;  %vm95_vm0 = vmor %vm80_vm12, %vm90_vm13  ;;  %vm675_vm5 = vnez %v674_v24 }
  0x53   :  { %377 = vmatprep.mubr.msk.f32.mxu0 %vm670_vm7, %v514_v3  ;;  %vm66_vm7 = vcmp.eq.s32.totalorder %v594_v10, %v327_v19 }
  0x54   :  { %vm81_vm14 = vmor %vm66_vm7, %vm76_vm8  ;;  %vm107_vm7 = vcmp.eq.s32.totalorder %v604_v12, %v330_v22 }
  0x55   :  { %vm96_vm9 = vmor %vm81_vm14, %vm91_vm15 }
  0x56   :  { %378 = vmatmul.mubr.msk.f32.gmra.mrb[4].mxu0 %vm183_vm6, %v180_v18  ;;  %vm630_vm6 = vmor %vm93_vm1, %vm103_vm2  ;;  %vm92_vm2 = vcmp.eq.s32.totalorder %v604_v12, %v329_v21 }
  0x57   :  { %vm82_vm1 = vmor %vm67_vm10, %vm77_vm11 }
  0x58   :  { %vm110_vm8 = vmor %vm95_vm0, %vm105_vm3 }
  0x59   :  { %vm111_vm10 = vmor %vm96_vm9, %vm106_vm4 }
 0x121   :  { %v265_v25 = vpop.f32.mrb[0].mxu0  ;;  %v280_v26 = vpop.f32.mrb[0].mxu1 }
 0x122   :  { %v289_v27 = vsel %vm630_vm6, %v265_v25, 0.0  ;;  %v373_v28 = vpop.f32.mrb[1].mxu0  ;;  %v382_v29 = vpop.f32.mrb[1].mxu1  ;;  %vm97_vm6 = vmor %vm82_vm1, %vm92_vm2  ;;  %v292_v40 = vsel %vm111_vm10, %v280_v26, 0.0 }
 0x123   :  { %vm112_vm11 = vmor %vm97_vm6, %vm107_vm7 }
 0x125   :  { %v270_v30 = vpop.f32.mrb[2].mxu0  ;;  %v285_v31 = vpop.f32.mrb[2].mxu1 }
 0x126   :  { %v290_v32 = vsel %vm675_vm5, %v270_v30, 0.0  ;;  %v376_v33 = vpop.f32.mrb[3].mxu0  ;;  %v385_v34 = vpop.f32.mrb[3].mxu1  ;;  %v293_v41 = vsel %vm112_vm11, %v285_v31, 0.0 }
 0x127   :  { %v294_v35 = vadd.f32 %v290_v32, %v289_v27 }
 0x129   :  { %v275_v36 = vpop.f32.mrb[4].mxu0 }
 0x12a   :  { %v291_v37 = vsel %vm110_vm8, %v275_v36, 0.0  ;;  %v379_v38 = vpop.f32.mrb[5].mxu0 }
 0x12b   :  { %v295_v39 = vadd.f32 %v294_v35, %v291_v37 }
 0x12d   :  { %v296_v42 = vadd.f32 %v295_v39, %v292_v40 }
 0x12f   :  { %v297_v43 = vadd.f32 %v296_v42, %v293_v41 }
 0x131   :  { %v298_v44 = vrot.slane %v297_v43, 4 }
 0x133   :  { %v299_v45 = vadd.f32 %v298_v44, %v297_v43 }
 0x135   :  { %v300_v46 = vrot.slane %v299_v45, 2 }
 0x137   :  { %v301_v47 = vadd.f32 %v300_v46, %v299_v45 }
 0x139   :  { %v302_v48 = vrot.slane %v301_v47, 1 }
 0x13b   :  { %v303_v49 = vadd.f32 %v302_v48, %v301_v47 }
 0x13d   :  { %v350_v50 = vmul.f32 -1.442695, %v303_v49 }
 0x13f   :  { %409 = vpow2.f32 %v350_v50 }
 0x149   :  { %v410_v51 = vpop.eup %409 }
 0x14a   :  { %v307_v52 = vadd.f32 1.0, %v410_v51 }
 0x14c   :  { %411 = vrcp.f32 %v307_v52 }
 0x156   :  { %v412_v53 = vpop.eup %411 }
 0x157   :  { %310 = vst [vmem:[#allocation8] sm:$0x1] %v412_v53 }
 0x158   :  { %490 = shalt.err (!%p487_p0)
}
 0x159   :  { %s491_s26 = scalar_lea.hbm %s667_s3, 16 }
 0x15a   :  { %p492_p1 = scmp.ne.s32.totalorder %s667_s3, %s491_s26  ;;  %p495_p2 = scmp.lt.u32.totalorder %s491_s26, %s667_s3 }
 0x15c   :  { %p497_p3 = pnand %p495_p2, %p492_p1 }
 0x15e   :  { %500 = shalt.err (!%p497_p3)
}
 0x15f   :  { %320 = dma.vmem_to_hbm [thread:$0]  %s318_s21, 16, %s667_s3, [#allocation4]  }
 0x160   :  { %505 = dma.done.wait [#allocation4], 16  }
 0x161   :  { %506 = vsyncadd [#allocation4], 4294967280 }
 0x162   :  { %324 = vsyncpa [#allocation3], 1 }
 0x163   :  { %325 = vsyncpa [#allocation6], 1 }
 0x164   :  { %326 = vsyncpa [#allocation4], 1 }

</bundles_post_ra>
